<compile_context>
chip_gen: v7x
topology: tpu7x:2x2x1
jax: 0.10.0
libtpu: 0.0.40
codegen_flags: <defaults>
</compile_context>

<pallas_src>
import math

import jax
import jax.numpy as jnp
from jax import lax
from jax.experimental import pallas as pl
from jax.experimental.pallas import tpu as pltpu

# ---- small config consistent with the toy model's ModelConfig style ----------
BATCH = 2
SEQ = 8                      # toy model runs prefill with seq_len == max_seq_len
MAX_SEQ_LEN = SEQ
EMBED = 64                   # embedding_dim
NUM_HEADS = 4                # attn_config.num_heads
NUM_KV_GROUPS = 2            # attn_config.num_query_groups (GQA)
HEAD_DIM = 16                # num_heads * head_dim == embedding_dim
ROT = HEAD_DIM // 2          # rotary_percentage = 1.0 -> cos/sin have dim head_dim//2
FFN = 128                    # ff_config.intermediate_size (GATED / SiLU)
VOCAB = 128                  # vocab_size
EPS = 1e-6                   # RMSNorm eps
ROPE_BASE = 10000.0
MASK_NEG = -1e30             # large finite negative (softmax-safe stand-in for -inf)
Q_SCALE = 1.0 / math.sqrt(HEAD_DIM)   # 0.25 exactly -> safe to fold into Q weights


# ------------------------------- kernel ---------------------------------------
def _rmsnorm(x, w):
  ms = jnp.mean(x * x, axis=-1, keepdims=True)
  return (x * lax.rsqrt(ms + EPS)) * w


def toy_block_kernel(x_ref, cos_ref, sin_ref, gmask_ref,
                     attn_norm_ref, wqkv_ref, wo_ref,
                     post_norm_ref, w13_ref, w2_ref,
                     final_norm_ref, wlm_ref, blm_ref,
                     out_ref):
  x = x_ref[0]                       # (R, D) f32 token embeddings
  cos6 = cos_ref[...]                # (R, (H+G)*ROT) = (R, 48)
  sin6 = sin_ref[...]
  gmask = gmask_ref[...]             # (H*R, G*R): causal + GQA group-select mask
  r = x.shape[0]

  # ---------------- pre-attention RMSNorm + fused QKV projection --------------
  xn = _rmsnorm(x, attn_norm_ref[...])
  qkv = jnp.dot(xn.astype(jnp.bfloat16), wqkv_ref[...],
                preferred_element_type=jnp.float32)            # (R, 128) f32 acc

  n_rot = (NUM_HEADS + NUM_KV_GROUPS) * ROT                     # 48
  lo = qkv[:, :n_rot]                # first  halves [q_h0..q_h3 | k_g0 k_g1]
  hi = qkv[:, n_rot:2 * n_rot]       # second halves [q_h0..q_h3 | k_g0 k_g1]
  v_all = qkv[:, 2 * n_rot:]         # (R, G*HEAD_DIM)  [v_g0 | v_g1]

  # RoPE for every head/group in one lane-dense elementwise pass (half-split).
  # Q columns were pre-scaled by 1/sqrt(head_dim) in the wrapper (exact, commutes
  # with the linear rotation), so no score scaling is needed later.
  rot_lo = lo * cos6 - hi * sin6
  rot_hi = lo * sin6 + hi * cos6

  # Stack heads (Q) / KV groups (K, V) along sublanes; one lane concat joins the
  # two rotated halves of the head dimension.
  q_lo = jnp.concatenate([rot_lo[:, h * ROT:(h + 1) * ROT]
                          for h in range(NUM_HEADS)], axis=0)   # (H*R, ROT)
  q_hi = jnp.concatenate([rot_hi[:, h * ROT:(h + 1) * ROT]
                          for h in range(NUM_HEADS)], axis=0)
  q_stacked = jnp.concatenate([q_lo, q_hi], axis=-1)            # (H*R, HEAD_DIM)
  koff = NUM_HEADS * ROT
  k_lo = jnp.concatenate([rot_lo[:, koff + g * ROT:koff + (g + 1) * ROT]
                          for g in range(NUM_KV_GROUPS)], axis=0)
  k_hi = jnp.concatenate([rot_hi[:, koff + g * ROT:koff + (g + 1) * ROT]
                          for g in range(NUM_KV_GROUPS)], axis=0)
  k_stacked = jnp.concatenate([k_lo, k_hi], axis=-1)            # (G*R, HEAD_DIM)
  v_stacked = jnp.concatenate([v_all[:, g * HEAD_DIM:(g + 1) * HEAD_DIM]
                               for g in range(NUM_KV_GROUPS)], axis=0)  # (G*R, Dh)

  # One score matmul over all heads x all KV groups; the additive gmask removes
  # both non-causal entries and the wrong KV group per head (large finite neg),
  # then one softmax and one PV matmul cover every head at once.
  scores = lax.dot_general(q_stacked.astype(jnp.bfloat16),
                           k_stacked.astype(jnp.bfloat16),
                           (((1,), (1,)), ((), ())),
                           preferred_element_type=jnp.float32)  # (H*R, G*R)
  scores = scores + gmask
  m = jnp.max(scores, axis=-1, keepdims=True)
  e = jnp.exp(scores - m)
  p = e * pl.reciprocal(jnp.sum(e, axis=-1, keepdims=True), approx=True)
  o_stacked = jnp.dot(p.astype(jnp.bfloat16), v_stacked.astype(jnp.bfloat16),
                      preferred_element_type=jnp.float32)       # (H*R, HEAD_DIM)

  # Un-stack heads back onto lanes and apply one fused output projection.
  o_cat = jnp.concatenate([o_stacked[h * r:(h + 1) * r, :]
                           for h in range(NUM_HEADS)], axis=-1)  # (R, H*HEAD_DIM)
  attn_out = jnp.dot(o_cat.astype(jnp.bfloat16), wo_ref[...],
                     preferred_element_type=jnp.float32)         # (R, D)
  x = x + attn_out

  # ---------------- post-attention RMSNorm + gated SiLU FFN -------------------
  xn2 = _rmsnorm(x, post_norm_ref[...])
  gu = jnp.dot(xn2.astype(jnp.bfloat16), w13_ref[...],
               preferred_element_type=jnp.float32)               # (R, 2*FFN)
  gate, up = gu[:, :FFN], gu[:, FFN:]
  sig = 0.5 * (jnp.tanh(0.5 * gate) + 1.0)   # logistic via tanh (EUP, no VALU divide)
  ff = jnp.dot((gate * sig * up).astype(jnp.bfloat16), w2_ref[...],
               preferred_element_type=jnp.float32)               # (R, D)
  x = x + ff

  # ---------------- final RMSNorm + lm_head ------------------------------------
  xf = _rmsnorm(x, final_norm_ref[...])
  logits = jnp.dot(xf.astype(jnp.bfloat16), wlm_ref[...],
                   preferred_element_type=jnp.float32) + blm_ref[...]
  out_ref[...] = logits[None, :, :]


# ------------------------------- wrapper --------------------------------------
def _fused_weights(params):
  """Lane-dense, bf16 weight layouts built once in the wrapper (layout plumbing)."""
  d = EMBED
  # Fold the attention score scale (exactly 0.25 = power of two) into Q weights:
  # bf16(0.25*w) == 0.25*bf16(w), so numerics are unchanged.
  wq = params["wq"] * Q_SCALE
  wk, wv = params["wk"], params["wv"]

  def cols(w, a, b):   # (N, D, Dh)[..., a:b] -> (D, N*(b-a)), head-major columns
    return jnp.transpose(w[:, :, a:b], (1, 0, 2)).reshape(d, -1)

  # Column order: [Q first-halves | K first-halves | Q second-halves | K second-halves | V]
  w_qkv = jnp.concatenate(
      [cols(wq, 0, ROT), cols(wk, 0, ROT),
       cols(wq, ROT, HEAD_DIM), cols(wk, ROT, HEAD_DIM),
       cols(wv, 0, HEAD_DIM)], axis=1).astype(jnp.bfloat16)        # (D, 128)
  w_o = params["wo"].reshape(NUM_HEADS * HEAD_DIM, d).astype(jnp.bfloat16)   # (64, 64)
  w13 = jnp.concatenate([params["w1"], params["w3"]], axis=1).astype(jnp.bfloat16)
  w2 = params["w2"].astype(jnp.bfloat16)
  wlm = params["lm_head_w"].astype(jnp.bfloat16)
  return w_qkv, w_o, w13, w2, wlm


def _group_select_mask(causal):
  """(R,R) additive causal mask -> (H*R, G*R) causal + GQA group-select mask."""
  r = causal.shape[0]
  hpg = NUM_HEADS // NUM_KV_GROUPS
  blocked = jnp.full((r, r), MASK_NEG, jnp.float32)
  rows = []
  for h in range(NUM_HEADS):
    g_sel = h // hpg
    rows.append(jnp.concatenate(
        [causal if g == g_sel else blocked for g in range(NUM_KV_GROUPS)], axis=1))
  return jnp.concatenate(rows, axis=0)


def _has_two_tensorcores():
  """v7x has 2 TensorCores per chip; v5e/v6e have 1."""
  try:
    kind = jax.devices()[0].device_kind.lower()
  except Exception:
    return False
  return ("v7" in kind) or ("7x" in kind)


def toy_single_layer_forward(idx, input_pos, params, fold_batch=True):
  # Embedding lookup + rope/mask cache index_select are glue (gathers), not the hot path.
  emb = jnp.take(params["tok_embedding"], idx, axis=0)              # (B, T, D)
  cos = jnp.take(params["rope_cos"], input_pos, axis=0)             # (T, ROT)
  sin = jnp.take(params["rope_sin"], input_pos, axis=0)
  mask = jnp.take(params["mask_cache"], input_pos, axis=0)[:, :MAX_SEQ_LEN]  # (T, T)
  mask = jnp.maximum(mask, MASK_NEG)          # finite large-negative mask

  b_dim, t, d = emb.shape

  if fold_batch:
    # v5e/v6e (1 TC): fold batch into rows, single grid step; block-diagonal
    # causal mask keeps batch elements from attending to each other.
    r = b_dim * t
    x = emb.reshape(1, r, d)
    rb = jnp.arange(r) // t
    causal = jnp.where(rb[:, None] == rb[None, :],
                       jnp.tile(mask, (b_dim, b_dim)), MASK_NEG)
    cos_r, sin_r = jnp.tile(cos, (b_dim, 1)), jnp.tile(sin, (b_dim, 1))
    grid_b = 1
  else:
    # v7x (2 TCs): keep grid=(B,) "parallel" so batch elements shard across cores.
    r, x, causal, cos_r, sin_r, grid_b = t, emb, mask, cos, sin, b_dim

  n_rope_blocks = NUM_HEADS + NUM_KV_GROUPS
  cos6 = jnp.tile(cos_r, (1, n_rope_blocks))          # (R, 48)
  sin6 = jnp.tile(sin_r, (1, n_rope_blocks))
  gmask = _group_select_mask(causal)                  # (H*R, G*R)
  w_qkv, w_o, w13, w2, wlm = _fused_weights(params)

  def full_spec(a):
    n = a.ndim
    return pl.BlockSpec(a.shape, lambda b, n=n: (0,) * n)

  args = (x, cos6, sin6, gmask,
          params["attn_norm_w"], w_qkv, w_o,
          params["post_norm_w"], w13, w2,
          params["final_norm_w"], wlm, params["lm_head_b"])
  in_specs = [pl.BlockSpec((1, r, d), lambda b: (b, 0, 0))] + [
      full_spec(a) for a in args[1:]]
  out_spec = pl.BlockSpec((1, r, VOCAB), lambda b: (b, 0, 0))

  out = pl.pallas_call(
      toy_block_kernel,
      out_shape=jax.ShapeDtypeStruct((grid_b, r, VOCAB), jnp.float32),
      grid_spec=pl.GridSpec(grid=(grid_b,), in_specs=in_specs, out_specs=out_spec),
      compiler_params=pltpu.CompilerParams(dimension_semantics=("parallel",)),
  )(*args)
  return out.reshape(b_dim, t, VOCAB)


# --------------------------- pure-JAX reference --------------------------------
def reference_forward(idx, input_pos, params):
  """f32 per-head mirror of ToySingleLayerModel.forward, for validation."""
  emb = jnp.take(params["tok_embedding"], idx, axis=0)
  cos = jnp.take(params["rope_cos"], input_pos, axis=0)
  sin = jnp.take(params["rope_sin"], input_pos, axis=0)
  mask = jnp.take(params["mask_cache"], input_pos, axis=0)[:, :MAX_SEQ_LEN]

  def rms(v, w):
    return v * lax.rsqrt(jnp.mean(v * v, axis=-1, keepdims=True) + EPS) * w

  def rope(v):                       # (B, T, HEAD_DIM)
    v1, v2 = v[..., :ROT], v[..., ROT:]
    return jnp.concatenate([v1 * cos - v2 * sin, v1 * sin + v2 * cos], axis=-1)

  scale = 1.0 / math.sqrt(HEAD_DIM)
  hpg = NUM_HEADS // NUM_KV_GROUPS
  x = emb
  xn = rms(x, params["attn_norm_w"])
  attn = jnp.zeros_like(x)
  for h in range(NUM_HEADS):
    g = h // hpg
    q = rope(xn @ params["wq"][h])
    k = rope(xn @ params["wk"][g])
    v = xn @ params["wv"][g]
    s = jnp.einsum("btd,bsd->bts", q, k) * scale + mask
    p = jax.nn.softmax(s, axis=-1)
    attn = attn + jnp.einsum("bts,bsd->btd", p, v) @ params["wo"][h]
  x = x + attn
  xn2 = rms(x, params["post_norm_w"])
  gate = xn2 @ params["w1"]
  up = xn2 @ params["w3"]
  x = x + (gate * jax.nn.sigmoid(gate) * up) @ params["w2"]
  xf = rms(x, params["final_norm_w"])
  return xf @ params["lm_head_w"] + params["lm_head_b"]


# --------------------------- deterministic params ------------------------------
def init_params(key):
  ks = jax.random.split(key, 12)

  def dense(k, shape, fan_in):
    return jax.random.normal(k, shape, jnp.float32) / math.sqrt(fan_in)

  params = {
      "tok_embedding": 0.02 * jax.random.normal(ks[0], (VOCAB, EMBED), jnp.float32),
      "attn_norm_w": jnp.ones((1, EMBED), jnp.float32),
      "wq": dense(ks[1], (NUM_HEADS, EMBED, HEAD_DIM), EMBED),
      "wk": dense(ks[2], (NUM_KV_GROUPS, EMBED, HEAD_DIM), EMBED),
      "wv": dense(ks[3], (NUM_KV_GROUPS, EMBED, HEAD_DIM), EMBED),
      "wo": dense(ks[4], (NUM_HEADS, HEAD_DIM, EMBED), NUM_HEADS * HEAD_DIM),
      "post_norm_w": jnp.ones((1, EMBED), jnp.float32),
      "w1": dense(ks[5], (EMBED, FFN), EMBED),      # gate proj
      "w3": dense(ks[6], (EMBED, FFN), EMBED),      # up proj
      "w2": dense(ks[7], (FFN, EMBED), FFN),        # down proj
      "final_norm_w": jnp.ones((1, EMBED), jnp.float32),
      "lm_head_w": dense(ks[8], (EMBED, VOCAB), EMBED),
      "lm_head_b": 0.01 * jax.random.normal(ks[9], (1, VOCAB), jnp.float32),
  }

  # rope cache (attn_utils.build_rope_cache semantics)
  theta = 1.0 / (ROPE_BASE ** (jnp.arange(0, HEAD_DIM, 2, dtype=jnp.float32) / HEAD_DIM))
  pos = jnp.arange(MAX_SEQ_LEN, dtype=jnp.float32)
  idx_theta = pos[:, None] * theta[None, :]
  params["rope_cos"] = jnp.cos(idx_theta)
  params["rope_sin"] = jnp.sin(idx_theta)

  # causal mask cache (attn_utils.build_causal_mask_cache semantics)
  rr = jnp.arange(MAX_SEQ_LEN)[:, None]
  cc = jnp.arange(MAX_SEQ_LEN)[None, :]
  params["mask_cache"] = jnp.where(cc <= rr, 0.0, -jnp.inf).astype(jnp.float32)
  return params


if __name__ == "__main__":
  key = jax.random.PRNGKey(0)
  pkey, ikey = jax.random.split(key)
  params = init_params(pkey)

  idx = jax.random.randint(ikey, (BATCH, SEQ), 0, VOCAB, dtype=jnp.int32)
  input_pos = jnp.arange(SEQ, dtype=jnp.int32)

  fold = not _has_two_tensorcores()     # fold batch on v5e/v6e, grid=(B,) on v7x
  logits = toy_single_layer_forward(idx, input_pos, params, fold_batch=fold)
  jax.block_until_ready(logits)

  assert logits.shape == (BATCH, SEQ, VOCAB) and logits.dtype == jnp.float32
  assert bool(jnp.all(jnp.isfinite(logits)))

  # Validate against the f32 per-head reference (kernel uses bf16 matmul inputs
  # + approx reciprocal, typical |diff| ~1e-2; structural bugs would be O(1)).
  ref = reference_forward(idx, input_pos, params)
  max_err = float(jnp.max(jnp.abs(logits - ref)))
  assert max_err < 2.5e-1, f"max |kernel - reference| too large: {max_err}"

  print("KERNEL_OK")
</pallas_src>

<mosaic_0001>
module attributes {stable_mosaic.version = 11 : i64} {
  func.func @toy_block_kernel(%arg0: i32, %arg1: memref<1x16x64xf32, #tpu.memory_space<vmem>>, %arg2: memref<16x48xf32, #tpu.memory_space<vmem>>, %arg3: memref<16x48xf32, #tpu.memory_space<vmem>>, %arg4: memref<64x32xf32, #tpu.memory_space<vmem>>, %arg5: memref<1x64xf32, #tpu.memory_space<vmem>>, %arg6: memref<64x128xbf16, #tpu.memory_space<vmem>>, %arg7: memref<64x64xbf16, #tpu.memory_space<vmem>>, %arg8: memref<1x64xf32, #tpu.memory_space<vmem>>, %arg9: memref<64x256xbf16, #tpu.memory_space<vmem>>, %arg10: memref<128x64xbf16, #tpu.memory_space<vmem>>, %arg11: memref<1x64xf32, #tpu.memory_space<vmem>>, %arg12: memref<64x128xbf16, #tpu.memory_space<vmem>>, %arg13: memref<1x128xf32, #tpu.memory_space<vmem>>, %arg14: memref<1x16x128xf32, #tpu.memory_space<vmem>>) attributes {dimension_semantics = [#tpu.dimension_semantics<parallel>], iteration_bounds = array<i64: 1>, scalar_prefetch = 0 : i64, scratch_operands = 0 : i64, tpu.core_type = #tpu.core_type<tc>, window_params = [{transform_indices = @transform_0, window_bounds = array<i64: 1, 16, 64>}, {pipeline_mode = #tpu.pipeline_mode<synchronous>, transform_indices = @transform_1, window_bounds = array<i64: 16, 48>}, {pipeline_mode = #tpu.pipeline_mode<synchronous>, transform_indices = @transform_2, window_bounds = array<i64: 16, 48>}, {pipeline_mode = #tpu.pipeline_mode<synchronous>, transform_indices = @transform_3, window_bounds = array<i64: 64, 32>}, {pipeline_mode = #tpu.pipeline_mode<synchronous>, transform_indices = @transform_4, window_bounds = array<i64: 1, 64>}, {pipeline_mode = #tpu.pipeline_mode<synchronous>, transform_indices = @transform_5, window_bounds = array<i64: 64, 128>}, {pipeline_mode = #tpu.pipeline_mode<synchronous>, transform_indices = @transform_6, window_bounds = array<i64: 64, 64>}, {pipeline_mode = #tpu.pipeline_mode<synchronous>, transform_indices = @transform_7, window_bounds = array<i64: 1, 64>}, {pipeline_mode = #tpu.pipeline_mode<synchronous>, transform_indices = @transform_8, window_bounds = array<i64: 64, 256>}, {pipeline_mode = #tpu.pipeline_mode<synchronous>, transform_indices = @transform_9, window_bounds = array<i64: 128, 64>}, {pipeline_mode = #tpu.pipeline_mode<synchronous>, transform_indices = @transform_10, window_bounds = array<i64: 1, 64>}, {pipeline_mode = #tpu.pipeline_mode<synchronous>, transform_indices = @transform_11, window_bounds = array<i64: 64, 128>}, {pipeline_mode = #tpu.pipeline_mode<synchronous>, transform_indices = @transform_12, window_bounds = array<i64: 1, 128>}, {transform_indices = @transform_13, window_bounds = array<i64: 1, 16, 128>}]} {
    %c0 = arith.constant 0 : index
    %c0_0 = arith.constant 0 : index
    %c0_1 = arith.constant 0 : index
    %0 = vector.load %arg1[%c0, %c0_0, %c0_1] : memref<1x16x64xf32, #tpu.memory_space<vmem>>, vector<1x16x64xf32>
    %1 = vector.shape_cast %0 : vector<1x16x64xf32> to vector<16x64xf32>
    %c0_2 = arith.constant 0 : index
    %c0_3 = arith.constant 0 : index
    %2 = vector.load %arg2[%c0_2, %c0_3] : memref<16x48xf32, #tpu.memory_space<vmem>>, vector<16x48xf32>
    %c0_4 = arith.constant 0 : index
    %c0_5 = arith.constant 0 : index
    %3 = vector.load %arg3[%c0_4, %c0_5] : memref<16x48xf32, #tpu.memory_space<vmem>>, vector<16x48xf32>
    %c0_6 = arith.constant 0 : index
    %c0_7 = arith.constant 0 : index
    %4 = vector.load %arg4[%c0_6, %c0_7] : memref<64x32xf32, #tpu.memory_space<vmem>>, vector<64x32xf32>
    %c0_8 = arith.constant 0 : index
    %c0_9 = arith.constant 0 : index
    %5 = vector.load %arg5[%c0_8, %c0_9] : memref<1x64xf32, #tpu.memory_space<vmem>>, vector<1x64xf32>
    %6 = arith.mulf %1, %1 : vector<16x64xf32>
    %cst = arith.constant dense<0.000000e+00> : vector<16xf32>
    %7 = vector.multi_reduction <add>, %6, %cst [1] : vector<16x64xf32> to vector<16xf32>
    %8 = vector.shape_cast %7 : vector<16xf32> to vector<16x1xf32>
    %cst_10 = arith.constant 6.400000e+01 : f32
    %9 = vector.broadcast %cst_10 : f32 to vector<16x1xf32>
    %10 = arith.divf %8, %9 : vector<16x1xf32>
    %cst_11 = arith.constant 9.99999997E-7 : f32
    %11 = vector.broadcast %cst_11 : f32 to vector<16x1xf32>
    %12 = arith.addf %10, %11 : vector<16x1xf32>
    %13 = math.rsqrt %12 : vector<16x1xf32>
    %14 = vector.broadcast %13 : vector<16x1xf32> to vector<16x64xf32>
    %15 = arith.mulf %1, %14 : vector<16x64xf32>
    %16 = vector.broadcast %5 : vector<1x64xf32> to vector<16x64xf32>
    %17 = arith.mulf %15, %16 : vector<16x64xf32>
    %18 = arith.truncf %17 : vector<16x64xf32> to vector<16x64xbf16>
    %c0_12 = arith.constant 0 : index
    %c0_13 = arith.constant 0 : index
    %19 = vector.load %arg6[%c0_12, %c0_13] : memref<64x128xbf16, #tpu.memory_space<vmem>>, vector<64x128xbf16>
    %cst_14 = arith.constant dense<0.000000e+00> : vector<16x128xf32>
    %20 = tpu.matmul %18, %19, %cst_14 {dimension_numbers = #tpu.dot_dimension_numbers<[1], [0], [0], [1], [0, 0, 1, 1], [], []>} : vector<16x64xbf16>, vector<64x128xbf16>, vector<16x128xf32> -> vector<16x128xf32>
    %21 = vector.extract_strided_slice %20 {offsets = [0, 0], sizes = [16, 48], strides = [1, 1]} : vector<16x128xf32> to vector<16x48xf32>
    %22 = vector.extract_strided_slice %20 {offsets = [0, 48], sizes = [16, 48], strides = [1, 1]} : vector<16x128xf32> to vector<16x48xf32>
    %23 = vector.extract_strided_slice %20 {offsets = [0, 96], sizes = [16, 32], strides = [1, 1]} : vector<16x128xf32> to vector<16x32xf32>
    %24 = arith.mulf %21, %2 : vector<16x48xf32>
    %25 = arith.mulf %22, %3 : vector<16x48xf32>
    %26 = arith.subf %24, %25 : vector<16x48xf32>
    %27 = arith.mulf %21, %3 : vector<16x48xf32>
    %28 = arith.mulf %22, %2 : vector<16x48xf32>
    %29 = arith.addf %27, %28 : vector<16x48xf32>
    %30 = vector.extract_strided_slice %26 {offsets = [0, 0], sizes = [16, 8], strides = [1, 1]} : vector<16x48xf32> to vector<16x8xf32>
    %31 = vector.extract_strided_slice %26 {offsets = [0, 8], sizes = [16, 8], strides = [1, 1]} : vector<16x48xf32> to vector<16x8xf32>
    %32 = vector.extract_strided_slice %26 {offsets = [0, 16], sizes = [16, 8], strides = [1, 1]} : vector<16x48xf32> to vector<16x8xf32>
    %33 = vector.extract_strided_slice %26 {offsets = [0, 24], sizes = [16, 8], strides = [1, 1]} : vector<16x48xf32> to vector<16x8xf32>
    %34 = tpu.concatenate %30, %31, %32, %33 in 0 : vector<16x8xf32>, vector<16x8xf32>, vector<16x8xf32>, vector<16x8xf32> -> vector<64x8xf32>
    %35 = vector.extract_strided_slice %29 {offsets = [0, 0], sizes = [16, 8], strides = [1, 1]} : vector<16x48xf32> to vector<16x8xf32>
    %36 = vector.extract_strided_slice %29 {offsets = [0, 8], sizes = [16, 8], strides = [1, 1]} : vector<16x48xf32> to vector<16x8xf32>
    %37 = vector.extract_strided_slice %29 {offsets = [0, 16], sizes = [16, 8], strides = [1, 1]} : vector<16x48xf32> to vector<16x8xf32>
    %38 = vector.extract_strided_slice %29 {offsets = [0, 24], sizes = [16, 8], strides = [1, 1]} : vector<16x48xf32> to vector<16x8xf32>
    %39 = tpu.concatenate %35, %36, %37, %38 in 0 : vector<16x8xf32>, vector<16x8xf32>, vector<16x8xf32>, vector<16x8xf32> -> vector<64x8xf32>
    %40 = tpu.concatenate %34, %39 in 1 : vector<64x8xf32>, vector<64x8xf32> -> vector<64x16xf32>
    %41 = vector.extract_strided_slice %26 {offsets = [0, 32], sizes = [16, 8], strides = [1, 1]} : vector<16x48xf32> to vector<16x8xf32>
    %42 = vector.extract_strided_slice %26 {offsets = [0, 40], sizes = [16, 8], strides = [1, 1]} : vector<16x48xf32> to vector<16x8xf32>
    %43 = tpu.concatenate %41, %42 in 0 : vector<16x8xf32>, vector<16x8xf32> -> vector<32x8xf32>
    %44 = vector.extract_strided_slice %29 {offsets = [0, 32], sizes = [16, 8], strides = [1, 1]} : vector<16x48xf32> to vector<16x8xf32>
    %45 = vector.extract_strided_slice %29 {offsets = [0, 40], sizes = [16, 8], strides = [1, 1]} : vector<16x48xf32> to vector<16x8xf32>
    %46 = tpu.concatenate %44, %45 in 0 : vector<16x8xf32>, vector<16x8xf32> -> vector<32x8xf32>
    %47 = tpu.concatenate %43, %46 in 1 : vector<32x8xf32>, vector<32x8xf32> -> vector<32x16xf32>
    %48 = vector.extract_strided_slice %23 {offsets = [0, 0], sizes = [16, 16], strides = [1, 1]} : vector<16x32xf32> to vector<16x16xf32>
    %49 = vector.extract_strided_slice %23 {offsets = [0, 16], sizes = [16, 16], strides = [1, 1]} : vector<16x32xf32> to vector<16x16xf32>
    %50 = tpu.concatenate %48, %49 in 0 : vector<16x16xf32>, vector<16x16xf32> -> vector<32x16xf32>
    %51 = arith.truncf %40 : vector<64x16xf32> to vector<64x16xbf16>
    %52 = arith.truncf %47 : vector<32x16xf32> to vector<32x16xbf16>
    %cst_15 = arith.constant dense<0.000000e+00> : vector<64x32xf32>
    %53 = tpu.matmul %51, %52, %cst_15 {dimension_numbers = #tpu.dot_dimension_numbers<[1], [1], [0], [0], [0, 0, 1, 0], [], []>} : vector<64x16xbf16>, vector<32x16xbf16>, vector<64x32xf32> -> vector<64x32xf32>
    %54 = arith.addf %53, %4 : vector<64x32xf32>
    %cst_16 = arith.constant dense<0xFF800000> : vector<64xf32>
    %55 = vector.multi_reduction <maximumf>, %54, %cst_16 [1] : vector<64x32xf32> to vector<64xf32>
    %56 = vector.shape_cast %55 : vector<64xf32> to vector<64x1xf32>
    %57 = vector.broadcast %56 : vector<64x1xf32> to vector<64x32xf32>
    %58 = arith.subf %54, %57 : vector<64x32xf32>
    %59 = math.exp %58 : vector<64x32xf32>
    %cst_17 = arith.constant dense<0.000000e+00> : vector<64xf32>
    %60 = vector.multi_reduction <add>, %59, %cst_17 [1] : vector<64x32xf32> to vector<64xf32>
    %61 = vector.shape_cast %60 : vector<64xf32> to vector<64x1xf32>
    %62 = tpu.reciprocal %61 {approx = true} : vector<64x1xf32> -> vector<64x1xf32>
    %63 = vector.broadcast %62 : vector<64x1xf32> to vector<64x32xf32>
    %64 = arith.mulf %59, %63 : vector<64x32xf32>
    %65 = arith.truncf %64 : vector<64x32xf32> to vector<64x32xbf16>
    %66 = arith.truncf %50 : vector<32x16xf32> to vector<32x16xbf16>
    %cst_18 = arith.constant dense<0.000000e+00> : vector<64x16xf32>
    %67 = tpu.matmul %65, %66, %cst_18 {dimension_numbers = #tpu.dot_dimension_numbers<[1], [0], [0], [1], [0, 0, 1, 1], [], []>} : vector<64x32xbf16>, vector<32x16xbf16>, vector<64x16xf32> -> vector<64x16xf32>
    %68 = vector.extract_strided_slice %67 {offsets = [0, 0], sizes = [16, 16], strides = [1, 1]} : vector<64x16xf32> to vector<16x16xf32>
    %69 = vector.extract_strided_slice %67 {offsets = [16, 0], sizes = [16, 16], strides = [1, 1]} : vector<64x16xf32> to vector<16x16xf32>
    %70 = vector.extract_strided_slice %67 {offsets = [32, 0], sizes = [16, 16], strides = [1, 1]} : vector<64x16xf32> to vector<16x16xf32>
    %71 = vector.extract_strided_slice %67 {offsets = [48, 0], sizes = [16, 16], strides = [1, 1]} : vector<64x16xf32> to vector<16x16xf32>
    %72 = tpu.concatenate %68, %69, %70, %71 in 1 : vector<16x16xf32>, vector<16x16xf32>, vector<16x16xf32>, vector<16x16xf32> -> vector<16x64xf32>
    %73 = arith.truncf %72 : vector<16x64xf32> to vector<16x64xbf16>
    %c0_19 = arith.constant 0 : index
    %c0_20 = arith.constant 0 : index
    %74 = vector.load %arg7[%c0_19, %c0_20] : memref<64x64xbf16, #tpu.memory_space<vmem>>, vector<64x64xbf16>
    %cst_21 = arith.constant dense<0.000000e+00> : vector<16x64xf32>
    %75 = tpu.matmul %73, %74, %cst_21 {dimension_numbers = #tpu.dot_dimension_numbers<[1], [0], [0], [1], [0, 0, 1, 1], [], []>} : vector<16x64xbf16>, vector<64x64xbf16>, vector<16x64xf32> -> vector<16x64xf32>
    %76 = arith.addf %1, %75 : vector<16x64xf32>
    %c0_22 = arith.constant 0 : index
    %c0_23 = arith.constant 0 : index
    %77 = vector.load %arg8[%c0_22, %c0_23] : memref<1x64xf32, #tpu.memory_space<vmem>>, vector<1x64xf32>
    %78 = arith.mulf %76, %76 : vector<16x64xf32>
    %cst_24 = arith.constant dense<0.000000e+00> : vector<16xf32>
    %79 = vector.multi_reduction <add>, %78, %cst_24 [1] : vector<16x64xf32> to vector<16xf32>
    %80 = vector.shape_cast %79 : vector<16xf32> to vector<16x1xf32>
    %cst_25 = arith.constant 6.400000e+01 : f32
    %81 = vector.broadcast %cst_25 : f32 to vector<16x1xf32>
    %82 = arith.divf %80, %81 : vector<16x1xf32>
    %cst_26 = arith.constant 9.99999997E-7 : f32
    %83 = vector.broadcast %cst_26 : f32 to vector<16x1xf32>
    %84 = arith.addf %82, %83 : vector<16x1xf32>
    %85 = math.rsqrt %84 : vector<16x1xf32>
    %86 = vector.broadcast %85 : vector<16x1xf32> to vector<16x64xf32>
    %87 = arith.mulf %76, %86 : vector<16x64xf32>
    %88 = vector.broadcast %77 : vector<1x64xf32> to vector<16x64xf32>
    %89 = arith.mulf %87, %88 : vector<16x64xf32>
    %90 = arith.truncf %89 : vector<16x64xf32> to vector<16x64xbf16>
    %c0_27 = arith.constant 0 : index
    %c0_28 = arith.constant 0 : index
    %91 = vector.load %arg9[%c0_27, %c0_28] : memref<64x256xbf16, #tpu.memory_space<vmem>>, vector<64x256xbf16>
    %cst_29 = arith.constant dense<0.000000e+00> : vector<16x256xf32>
    %92 = tpu.matmul %90, %91, %cst_29 {dimension_numbers = #tpu.dot_dimension_numbers<[1], [0], [0], [1], [0, 0, 1, 1], [], []>} : vector<16x64xbf16>, vector<64x256xbf16>, vector<16x256xf32> -> vector<16x256xf32>
    %93 = vector.extract_strided_slice %92 {offsets = [0, 0], sizes = [16, 128], strides = [1, 1]} : vector<16x256xf32> to vector<16x128xf32>
    %94 = vector.extract_strided_slice %92 {offsets = [0, 128], sizes = [16, 128], strides = [1, 1]} : vector<16x256xf32> to vector<16x128xf32>
    %cst_30 = arith.constant 5.000000e-01 : f32
    %95 = vector.broadcast %cst_30 : f32 to vector<16x128xf32>
    %96 = arith.mulf %95, %93 : vector<16x128xf32>
    %97 = math.tanh %96 : vector<16x128xf32>
    %cst_31 = arith.constant 1.000000e+00 : f32
    %98 = vector.broadcast %cst_31 : f32 to vector<16x128xf32>
    %99 = arith.addf %97, %98 : vector<16x128xf32>
    %cst_32 = arith.constant 5.000000e-01 : f32
    %100 = vector.broadcast %cst_32 : f32 to vector<16x128xf32>
    %101 = arith.mulf %100, %99 : vector<16x128xf32>
    %102 = arith.mulf %93, %101 : vector<16x128xf32>
    %103 = arith.mulf %102, %94 : vector<16x128xf32>
    %104 = arith.truncf %103 : vector<16x128xf32> to vector<16x128xbf16>
    %c0_33 = arith.constant 0 : index
    %c0_34 = arith.constant 0 : index
    %105 = vector.load %arg10[%c0_33, %c0_34] : memref<128x64xbf16, #tpu.memory_space<vmem>>, vector<128x64xbf16>
    %cst_35 = arith.constant dense<0.000000e+00> : vector<16x64xf32>
    %106 = tpu.matmul %104, %105, %cst_35 {dimension_numbers = #tpu.dot_dimension_numbers<[1], [0], [0], [1], [0, 0, 1, 1], [], []>} : vector<16x128xbf16>, vector<128x64xbf16>, vector<16x64xf32> -> vector<16x64xf32>
    %107 = arith.addf %76, %106 : vector<16x64xf32>
    %c0_36 = arith.constant 0 : index
    %c0_37 = arith.constant 0 : index
    %108 = vector.load %arg11[%c0_36, %c0_37] : memref<1x64xf32, #tpu.memory_space<vmem>>, vector<1x64xf32>
    %109 = arith.mulf %107, %107 : vector<16x64xf32>
    %cst_38 = arith.constant dense<0.000000e+00> : vector<16xf32>
    %110 = vector.multi_reduction <add>, %109, %cst_38 [1] : vector<16x64xf32> to vector<16xf32>
    %111 = vector.shape_cast %110 : vector<16xf32> to vector<16x1xf32>
    %cst_39 = arith.constant 6.400000e+01 : f32
    %112 = vector.broadcast %cst_39 : f32 to vector<16x1xf32>
    %113 = arith.divf %111, %112 : vector<16x1xf32>
    %cst_40 = arith.constant 9.99999997E-7 : f32
    %114 = vector.broadcast %cst_40 : f32 to vector<16x1xf32>
    %115 = arith.addf %113, %114 : vector<16x1xf32>
    %116 = math.rsqrt %115 : vector<16x1xf32>
    %117 = vector.broadcast %116 : vector<16x1xf32> to vector<16x64xf32>
    %118 = arith.mulf %107, %117 : vector<16x64xf32>
    %119 = vector.broadcast %108 : vector<1x64xf32> to vector<16x64xf32>
    %120 = arith.mulf %118, %119 : vector<16x64xf32>
    %121 = arith.truncf %120 : vector<16x64xf32> to vector<16x64xbf16>
    %c0_41 = arith.constant 0 : index
    %c0_42 = arith.constant 0 : index
    %122 = vector.load %arg12[%c0_41, %c0_42] : memref<64x128xbf16, #tpu.memory_space<vmem>>, vector<64x128xbf16>
    %cst_43 = arith.constant dense<0.000000e+00> : vector<16x128xf32>
    %123 = tpu.matmul %121, %122, %cst_43 {dimension_numbers = #tpu.dot_dimension_numbers<[1], [0], [0], [1], [0, 0, 1, 1], [], []>} : vector<16x64xbf16>, vector<64x128xbf16>, vector<16x128xf32> -> vector<16x128xf32>
    %c0_44 = arith.constant 0 : index
    %c0_45 = arith.constant 0 : index
    %124 = vector.load %arg13[%c0_44, %c0_45] : memref<1x128xf32, #tpu.memory_space<vmem>>, vector<1x128xf32>
    %125 = vector.broadcast %124 : vector<1x128xf32> to vector<16x128xf32>
    %126 = arith.addf %123, %125 : vector<16x128xf32>
    %127 = vector.shape_cast %126 : vector<16x128xf32> to vector<1x16x128xf32>
    %c0_46 = arith.constant 0 : index
    %c0_47 = arith.constant 0 : index
    %c0_48 = arith.constant 0 : index
    %128 = vector.load %arg14[%c0_46, %c0_47, %c0_48] : memref<1x16x128xf32, #tpu.memory_space<vmem>>, vector<1x16x128xf32>
    tpu.vector_store %arg14[%c0_46, %c0_47, %c0_48], %127 {strides = array<i32>} : memref<1x16x128xf32, #tpu.memory_space<vmem>>, vector<1x16x128xf32>,
    return
  }
  func.func @transform_0(%arg0: i32) -> (i32, i32, i32) {
    %c0_i32 = arith.constant 0 : i32
    %c0_i32_0 = arith.constant 0 : i32
    %c0_i32_1 = arith.constant 0 : i32
    return %arg0, %c0_i32, %c0_i32_0 : i32, i32, i32
  }
  func.func @transform_1(%arg0: i32) -> (i32, i32) {
    %c0_i32 = arith.constant 0 : i32
    %c0_i32_0 = arith.constant 0 : i32
    %c0_i32_1 = arith.constant 0 : i32
    return %c0_i32, %c0_i32_0 : i32, i32
  }
  func.func @transform_2(%arg0: i32) -> (i32, i32) {
    %c0_i32 = arith.constant 0 : i32
    %c0_i32_0 = arith.constant 0 : i32
    %c0_i32_1 = arith.constant 0 : i32
    return %c0_i32, %c0_i32_0 : i32, i32
  }
  func.func @transform_3(%arg0: i32) -> (i32, i32) {
    %c0_i32 = arith.constant 0 : i32
    %c0_i32_0 = arith.constant 0 : i32
    %c0_i32_1 = arith.constant 0 : i32
    return %c0_i32, %c0_i32_0 : i32, i32
  }
  func.func @transform_4(%arg0: i32) -> (i32, i32) {
    %c0_i32 = arith.constant 0 : i32
    %c0_i32_0 = arith.constant 0 : i32
    %c0_i32_1 = arith.constant 0 : i32
    return %c0_i32, %c0_i32_0 : i32, i32
  }
  func.func @transform_5(%arg0: i32) -> (i32, i32) {
    %c0_i32 = arith.constant 0 : i32
    %c0_i32_0 = arith.constant 0 : i32
    %c0_i32_1 = arith.constant 0 : i32
    return %c0_i32, %c0_i32_0 : i32, i32
  }
  func.func @transform_6(%arg0: i32) -> (i32, i32) {
    %c0_i32 = arith.constant 0 : i32
    %c0_i32_0 = arith.constant 0 : i32
    %c0_i32_1 = arith.constant 0 : i32
    return %c0_i32, %c0_i32_0 : i32, i32
  }
  func.func @transform_7(%arg0: i32) -> (i32, i32) {
    %c0_i32 = arith.constant 0 : i32
    %c0_i32_0 = arith.constant 0 : i32
    %c0_i32_1 = arith.constant 0 : i32
    return %c0_i32, %c0_i32_0 : i32, i32
  }
  func.func @transform_8(%arg0: i32) -> (i32, i32) {
    %c0_i32 = arith.constant 0 : i32
    %c0_i32_0 = arith.constant 0 : i32
    %c0_i32_1 = arith.constant 0 : i32
    return %c0_i32, %c0_i32_0 : i32, i32
  }
  func.func @transform_9(%arg0: i32) -> (i32, i32) {
    %c0_i32 = arith.constant 0 : i32
    %c0_i32_0 = arith.constant 0 : i32
    %c0_i32_1 = arith.constant 0 : i32
    return %c0_i32, %c0_i32_0 : i32, i32
  }
  func.func @transform_10(%arg0: i32) -> (i32, i32) {
    %c0_i32 = arith.constant 0 : i32
    %c0_i32_0 = arith.constant 0 : i32
    %c0_i32_1 = arith.constant 0 : i32
    return %c0_i32, %c0_i32_0 : i32, i32
  }
  func.func @transform_11(%arg0: i32) -> (i32, i32) {
    %c0_i32 = arith.constant 0 : i32
    %c0_i32_0 = arith.constant 0 : i32
    %c0_i32_1 = arith.constant 0 : i32
    return %c0_i32, %c0_i32_0 : i32, i32
  }
  func.func @transform_12(%arg0: i32) -> (i32, i32) {
    %c0_i32 = arith.constant 0 : i32
    %c0_i32_0 = arith.constant 0 : i32
    %c0_i32_1 = arith.constant 0 : i32
    return %c0_i32, %c0_i32_0 : i32, i32
  }
  func.func @transform_13(%arg0: i32) -> (i32, i32, i32) {
    %c0_i32 = arith.constant 0 : i32
    %c0_i32_0 = arith.constant 0 : i32
    %c0_i32_1 = arith.constant 0 : i32
    return %arg0, %c0_i32, %c0_i32_0 : i32, i32, i32
  }
}

</mosaic_0001>

<bundles_post_ra>
// kernel: tpu_custom_call.1
= control target key start
LH: loop header
LB: loop body
LE: loop exit
PB: predicated region body
PF: predicated region fallthrough
CT: control target
= control target key end

     0   :  { %18 = vsyncpa [#allocation3], 0  ;;  %s1956_s0 = inlined_call_operand.hbm [shape: f32[1,16,64], index: 0, kind: input, shape index: {}]   ;;  %s1957_s1 = inlined_call_operand.hbm [shape: f32[16,48], index: 1, kind: input, shape index: {}]   ;;  %s1958_s2 = inlined_call_operand.hbm [shape: f32[16,48], index: 2, kind: input, shape index: {}]   ;;  %s1959_s3 = inlined_call_operand.vmem [shape: f32[64,32], index: 3, kind: input, shape index: {}]   ;;  %s1960_s4 = inlined_call_operand.vmem [shape: f32[1,64], index: 4, kind: input, shape index: {}]   ;;  %s1961_s5 = inlined_call_operand.vmem [shape: bf16[64,128], index: 5, kind: input, shape index: {}]   ;;  %s1962_s6 = inlined_call_operand.vmem [shape: bf16[64,64], index: 6, kind: input, shape index: {}]   ;;  %s1963_s7 = inlined_call_operand.vmem [shape: f32[1,64], index: 7, kind: input, shape index: {}]   ;;  %s1964_s8 = inlined_call_operand.vmem [shape: bf16[64,256], index: 8, kind: input, shape index: {}]   ;;  %s1965_s9 = inlined_call_operand.vmem [shape: bf16[128,64], index: 9, kind: input, shape index: {}]   ;;  %s1966_s10 = inlined_call_operand.vmem [shape: f32[1,64], index: 10, kind: input, shape index: {}]   ;;  %s1967_s11 = inlined_call_operand.vmem [shape: bf16[64,128], index: 11, kind: input, shape index: {}]   ;;  %s1968_s12 = inlined_call_operand.vmem [shape: f32[1,128], index: 12, kind: input, shape index: {}]   ;;  %s1969_s13 = inlined_call_operand.hbm [shape: f32[1,16,128], index: 13, kind: output, shape index: {}]  }
   0x1   :  { %19 = vsyncpa [#allocation6], 0 }
   0x2   :  { %20 = vsyncpa [#allocation4], 0  ;;  %s1535_s25 = smov [#allocation5]   ;;  %s1536_s27 = smov [#allocation2]  }
   0x3   :  { %s38_s26 = sshll.u32 %s1535_s25, 4  ;;  %s26_s28 = sshll.u32 %s1536_s27, 4  ;;  %s39_s26 = int_to_ptr.vmem [resolvable:$true] %s38_s26  ;;  %s1622_s28 = int_to_ptr.vmem [resolvable:$true] %s26_s28 }
   0x4   :  { %s1441_s14 = scalar_lea.hbm %s1957_s1, 256 }
   0x5   :  { %p1442_p0 = scmp.ne.s32.totalorder %s1957_s1, %s1441_s14  ;;  %p1445_p1 = scmp.lt.u32.totalorder %s1441_s14, %s1957_s1 }
   0x7   :  { %p1447_p2 = pnand %p1445_p1, %p1442_p0 }
   0x9   :  { %1450 = shalt.err (!%p1447_p2)
}
   0xa   :  { %s1451_s19 = scalar_lea.vmem %s39_s26, 256  ;;  %p1456_p4 = scmp.lt.s32.totalorder %s39_s26, %s39_s26 }
   0xb   :  { %p1452_p3 = scmp.ne.s32.totalorder %s39_s26, %s1451_s19  ;;  %p1457_p5 = scmp.lt.s32.totalorder %s1451_s19, %s1451_s19 }
   0xd   :  { %p1458_p6 = por %p1457_p5, %p1456_p4 }
   0xf   :  { %p1459_p7 = pnand %p1458_p6, %p1452_p3 }
  0x11   :  { %1462 = shalt.err (!%p1459_p7)
}
  0x12   :  { %s1537_s20 = smov 128   ;;  %s1538_s21 = smov 8  }
  0x13   :  { %44 = dma.hbm_to_vmem [thread:$0]  %s1957_s1, 256, %s39_s26, [#allocation6], %s1537_s20, %s1537_s20, %s1538_s21  }
  0x14   :  { %s1463_s27 = scalar_lea.hbm %s1956_s0, 256 }
  0x15   :  { %p1464_p8 = scmp.ne.s32.totalorder %s1956_s0, %s1463_s27  ;;  %p1467_p9 = scmp.lt.u32.totalorder %s1463_s27, %s1956_s0 }
  0x17   :  { %p1469_p10 = pnand %p1467_p9, %p1464_p8 }
  0x19   :  { %1472 = shalt.err (!%p1469_p10)
}
  0x1a   :  { %s1473_s16 = scalar_lea.vmem %s1622_s28, 256  ;;  %p1478_p12 = scmp.lt.s32.totalorder %s1622_s28, %s1622_s28 }
  0x1b   :  { %p1474_p11 = scmp.ne.s32.totalorder %s1622_s28, %s1473_s16  ;;  %p1479_p13 = scmp.lt.s32.totalorder %s1473_s16, %s1473_s16 }
  0x1d   :  { %p1480_p0 = por %p1479_p13, %p1478_p12 }
  0x1f   :  { %p1481_p1 = pnand %p1480_p0, %p1474_p11 }
  0x21   :  { %1484 = shalt.err (!%p1481_p1)
}
  0x22   :  { %32 = dma.hbm_to_vmem [thread:$0]  %s1956_s0, 256, %s1622_s28, [#allocation3], %s1537_s20, %s1537_s20, %s1538_s21  }
  0x23   :  { %s1539_s17 = smov [#allocation7]   ;;  %s1485_s23 = scalar_lea.hbm %s1958_s2, 256 }
  0x24   :  { %s50_s18 = sshll.u32 %s1539_s17, 4  ;;  %p1486_p2 = scmp.ne.s32.totalorder %s1958_s2, %s1485_s23  ;;  %s51_s18 = int_to_ptr.vmem [resolvable:$true] %s50_s18 }
  0x25   :  { %p1489_p3 = scmp.lt.u32.totalorder %s1485_s23, %s1958_s2 }
  0x27   :  { %p1491_p4 = pnand %p1489_p3, %p1486_p2 }
  0x29   :  { %1494 = shalt.err (!%p1491_p4)
}
  0x2a   :  { %s1495_s30 = scalar_lea.vmem %s51_s18, 256  ;;  %p1500_p6 = scmp.lt.s32.totalorder %s51_s18, %s51_s18 }
  0x2b   :  { %p1496_p5 = scmp.ne.s32.totalorder %s51_s18, %s1495_s30  ;;  %p1501_p7 = scmp.lt.s32.totalorder %s1495_s30, %s1495_s30 }
  0x2d   :  { %p1502_p8 = por %p1501_p7, %p1500_p6 }
  0x2f   :  { %p1503_p9 = pnand %p1502_p8, %p1496_p5 }
  0x31   :  { %1506 = shalt.err (!%p1503_p9)
}
  0x32   :  { %56 = dma.hbm_to_vmem [thread:$0]  %s1958_s2, 256, %s51_s18, [#allocation6], %s1537_s20, %s1537_s20, %s1538_s21  }
  0x33   :  { %1529 = dma.done.wait [#allocation3], 256  }
  0x34   :  { %1530 = vsyncadd [#allocation3], 4294967040 }
  0x35   :  { %1531 = dma.done.wait [#allocation6], 512  }
  0x36   :  { %1532 = vsyncadd [#allocation6], 4294966784  ;;  %v1674_v0 = vld [vmem:[#allocation2] sm:$0xff]  ;;  %vm104_vm0 = vcmask 523264   ;;  %v1676_v1 = vld [vmem:[#allocation2 + $0x8] sm:$0xff]  ;;  %v1540_v7 = vmov 0.0  }
  0x37   :  { %v102_v2 = vmul.f32 %v1674_v0, %v1674_v0  ;;  %v103_v3 = vmul.f32 %v1676_v1, %v1676_v1  ;;  %v1361_v6 = vld [vmem:[%s1961_s5] sm:$0xff]   ;;  %1177 = vmatprep.subr.bf16.mxu0 %v1540_v7  ;;  %vm1541_vm1 = vmmov 0   ;;  %v1362_v8 = vld [vmem:[%s1961_s5 + $0x8] sm:$0xff]   ;;  %v1363_v9 = vld [vmem:[%s1961_s5 + $0x10] sm:$0xff]   ;;  %s1542_s19 = smov 48   ;;  %s1543_s23 = smov 80  }
  0x38   :  { %1185 = vmatprep.mubr.msk.bf16.mxu0 %vm1541_vm1, %v1540_v7  ;;  %1178 = vmatpush3.bf16.msra.mxu0 %v1361_v6  ;;  %v1364_v10 = vld [vmem:[%s1961_s5 + $0x18] sm:$0xff]   ;;  %v91_v11 = vld [vmem:[#allocation7] sm:$0xff]  ;;  %v89_v12 = vld [vmem:[#allocation5] sm:$0xff]  ;;  %s1545_s24 = smov 112   ;;  %s1546_s25 = smov 96   ;;  %vm307_vm2 = vcmask 64512  }
  0x39   :  { %v105_v4 = vsel %vm104_vm0, %v102_v2, 0.0  ;;  %v108_v5 = vsel %vm104_vm0, %v103_v3, 0.0  ;;  %1179 = vmatprep.subr.bf16.mxu0 %v1540_v7  ;;  %209 = vrot.lane.b32.xlu1 %v91_v11, %s1542_s19  ;;  %v92_v13 = vld [vmem:[#allocation7 + $0x8] sm:$0xff]  ;;  %v90_v14 = vld [vmem:[#allocation5 + $0x8] sm:$0xff]  ;;  %v1097_v24 = vld [vmem:[%s1960_s4] ss:$0 sm:$0xff] }
  0x3a   :  { %106 = vadd.xlane.f32.xlu0 %v105_v4  ;;  %s1544_s4 = smov 120   ;;  %s1547_s27 = smov 104   ;;  %vm354_vm3 = vcmask 130048   ;;  %vm438_vm4 = vcmask 261120   ;;  %vm646_vm5 = vcmask 392192  }
  0x3b   :  { %s1549_s28 = smov 16  }
  0x3c   :  { %1180 = vmatpush3.bf16.msra.mxu0 %v1362_v8 }
  0x3d   :  { %1181 = vmatprep.subr.bf16.mxu0 %v1540_v7  ;;  %211 = vrot.lane.b32.xlu1 %v92_v13, %s1542_s19 }
  0x3e   :  { %109 = vadd.xlane.f32.xlu0 %v108_v5 }
  0x40   :  { %1182 = vmatpush3.bf16.msra.mxu0 %v1363_v9 }
  0x41   :  { %1183 = vmatprep.subr.bf16.mxu0 %v1540_v7  ;;  %233 = vrot.lane.b32.xlu1 %v90_v14, %s1542_s19 }
  0x44   :  { %1184 = vmatpush3.bf16.msra.mxu0 %v1364_v10 }
  0x54   :  { %231 = vrot.lane.b32.xlu0 %v89_v12, %s1542_s19 }
  0xab   :  { %v210_v29 = vpop.permute.xlu1 %209 }
  0xaf   :  { %v212_v36 = vpop.permute.xlu1 %211 }
  0xb3   :  { %v234_v41 = vpop.permute.xlu1 %233 }
  0xc7   :  { %v107_v15 = vpop.xlane.xlu0 %106 }
  0xc8   :  { %v112_v16 = vmul.f32 0.015625, %v107_v15 }
  0xca   :  { %v114_v17 = vadd.f32 1e-06, %v112_v16 }
  0xcb   :  { %v110_v18 = vpop.xlane.xlu0 %109 }
  0xcc   :  { %1393 = vrsqrt.f32 %v114_v17  ;;  %v113_v19 = vmul.f32 0.015625, %v110_v18 }
  0xce   :  { %v115_v20 = vadd.f32 1e-06, %v113_v19 }
  0xcf   :  { %v232_v33 = vpop.permute.xlu0 %231 }
  0xd0   :  { %1395 = vrsqrt.f32 %v115_v20 }
  0xd6   :  { %v1394_v21 = vpop.eup %1393 }
  0xd7   :  { %v118_v22 = vmul.f32 %v1394_v21, %v1674_v0 }
  0xd9   :  { %v126_v26 = vmul.f32 %v1097_v24, %v118_v22 }
  0xda   :  { %v1396_v23 = vpop.eup %1395 }
  0xdb   :  { %v119_v25 = vmul.f32 %v1396_v23, %v1676_v1 }
  0xdd   :  { %v127_v27 = vmul.f32 %v1097_v24, %v119_v25 }
  0xdf   :  { %v128_v28 = vpack.c.bf16 %v127_v27, %v126_v26 }
  0xe1   :  { %1186 = vmatmul.mubr.msk.bf16.vlgmr.msra.gmra.mrb[0].mxu0 %vm104_vm0, %v128_v28 }
 0x1b4   :  { %v1712_v30 = vpop.f32.mrb[0].mxu0 }
 0x1b5   :  { %v1187_v31 = vpop.f32.mrb[1].mxu0  ;;  %v215_v32 = vmul.f32 %v210_v29, %v1712_v30  ;;  %v237_v39 = vmul.f32 %v232_v33, %v1712_v30  ;;  %v205_v45 = vmul.f32 %v1712_v30, %v89_v12  ;;  %v227_v50 = vmul.f32 %v1712_v30, %v91_v11 }
 0x1b6   :  { %v1715_v34 = vpop.f32.mrb[2].mxu0 }
 0x1b7   :  { %219 = vrot.lane.b32.xlu1 %v215_v32, %s1543_s23  ;;  %v1188_v35 = vpop.f32.mrb[3].mxu0  ;;  %v1341_v37 = vpack.i.bf16 %v1715_v34, %v1712_v30  ;;  %v531_v38 = vpack.c.bf16 %v1715_v34, %v1712_v30  ;;  %v216_v40 = vmul.f32 %v212_v36, %v1715_v34  ;;  %v238_v42 = vmul.f32 %v234_v41, %v1715_v34 }
 0x1b8   :  { %v206_v46 = vmul.f32 %v1715_v34, %v90_v14  ;;  %v228_v51 = vmul.f32 %v1715_v34, %v92_v13 }
 0x1bb   :  { %241 = vrot.lane.b32.xlu1 %v237_v39, %s1543_s23 }
 0x1bf   :  { %221 = vrot.lane.b32.xlu1 %v216_v40, %s1543_s23 }
 0x1c3   :  { %243 = vrot.lane.b32.xlu1 %v238_v42, %s1543_s23 }
 0x229   :  { %v220_v43 = vpop.permute.xlu1 %219 }
 0x22a   :  { %v225_v48 = vsub.f32 %v205_v45, %v220_v43 }
 0x22d   :  { %v242_v44 = vpop.permute.xlu1 %241 }
 0x22e   :  { %v247_v54 = vadd.f32 %v242_v44, %v227_v50 }
 0x231   :  { %v222_v47 = vpop.permute.xlu1 %221 }
 0x232   :  { %v226_v49 = vsub.f32 %v206_v46, %v222_v47 }
 0x234   :  { %v1276_v52 = vpack.i.bf16 %v226_v49, %v225_v48 }
 0x235   :  { %v244_v53 = vpop.permute.xlu1 %243 }
 0x236   :  { %v248_v55 = vadd.f32 %v244_v53, %v228_v51  ;;  %1277 = vrot.lane.b32.xlu1 %v1276_v52, %s1544_s4 }
 0x238   :  { %v1286_v56 = vpack.i.bf16 %v248_v55, %v247_v54  ;;  %v93_v55 = vld [vmem:[%s1959_s3] sm:$0xff] }
 0x23a   :  { %1287 = vrot.lane.b32.xlu1 %v1286_v56, %s1545_s24  ;;  %1282 = vrot.lane.b32.xlu0 %v1286_v56, %s1544_s4 }
 0x23e   :  { %1297 = vrot.lane.b32.xlu1 %v1276_v52, %s1546_s25  ;;  %1292 = vrot.lane.b32.xlu0 %v1286_v56, %s1547_s27 }
 0x2a8   :  { %v1278_v57 = vpop.permute.xlu1 %1277 }
 0x2a9   :  { %v1280_v58 = vunpack.i.h.bf16 %v1278_v57  ;;  %v1279_v59 = vunpack.i.l.bf16 %v1278_v57  ;;  %1302 = vrot.lane.b32.xlu0 %v1278_v57, %s1546_s25  ;;  %v95_v57 = vld [vmem:[%s1959_s3 + $0x10] sm:$0xff] }
 0x2ac   :  { %v1283_v60 = vpop.permute.xlu0 %1282  ;;  %v1288_v61 = vpop.permute.xlu1 %1287 }
 0x2ad   :  { %1307 = vrot.lane.b32.xlu1 %v1283_v60, %s1547_s27  ;;  %1312 = vrot.lane.b32.xlu0 %v1286_v56, %s1538_s21 }
 0x2b0   :  { %v1293_v62 = vpop.permute.xlu0 %1292  ;;  %v1298_v63 = vpop.permute.xlu1 %1297 }
 0x2b1   :  { %v1295_v2 = vunpack.i.h.bf16 %v1293_v62  ;;  %v1294_v3 = vunpack.i.l.bf16 %v1293_v62  ;;  %v1300_v4 = vunpack.i.h.bf16 %v1298_v63  ;;  %v1299_v5 = vunpack.i.l.bf16 %v1298_v63  ;;  %1327 = vrot.lane.b32.xlu1 %v1283_v60, %s1538_s21  ;;  %1317 = vrot.lane.b32.xlu0 %v1276_v52, %s1545_s24 }
 0x2b3   :  { %v336_v6 = vsel %vm307_vm2, %v1299_v5, %v1294_v3  ;;  %v337_v8 = vsel %vm307_vm2, %v1300_v4, %v1295_v2  ;;  %v96_v4 = vld [vmem:[%s1959_s3 + $0x18] sm:$0xff] }
 0x2b4   :  { %v352_v9 = vpack.c.bf16 %v337_v8, %v336_v6  ;;  %v97_v6 = vld [vmem:[%s1959_s3 + $0x20] sm:$0xff] }
 0x2b5   :  { %1332 = vrot.lane.b32.xlu1 %v1288_v61, %s1538_s21  ;;  %1322 = vrot.lane.b32.xlu0 %v1276_v52, %s1547_s27 }
 0x2b6   :  { %1257 = vmatprep.subr.msk.bf16.mxu1 %vm354_vm3, %v352_v9  ;;  %v368_v10 = vsel %vm354_vm3, %v352_v9, 0 }
 0x2b7   :  { %1190 = vmatpush3.bf16.xpose.msra.mxu1 %v368_v10 }
 0x2b9   :  { %1337 = vrot.lane.b32.xlu1 %v1293_v62, %s1538_s21 }
 0x31b   :  { %v1303_v11 = vpop.permute.xlu0 %1302 }
 0x31c   :  { %v1305_v12 = vunpack.i.h.bf16 %v1303_v11  ;;  %v1304_v13 = vunpack.i.l.bf16 %v1303_v11  ;;  %v99_v11 = vld [vmem:[%s1959_s3 + $0x30] sm:$0xff] }
 0x31f   :  { %v1308_v14 = vpop.permute.xlu1 %1307  ;;  %v1313_v15 = vpop.permute.xlu0 %1312 }
 0x320   :  { %v1310_v16 = vunpack.i.h.bf16 %v1308_v14  ;;  %v1309_v17 = vunpack.i.l.bf16 %v1308_v14  ;;  %v1315_v18 = vunpack.i.h.bf16 %v1313_v15  ;;  %v1314_v19 = vunpack.i.l.bf16 %v1313_v15 }
 0x322   :  { %v338_v20 = vsel %vm307_vm2, %v1304_v13, %v1309_v17  ;;  %v339_v21 = vsel %vm307_vm2, %v1305_v12, %v1310_v16  ;;  %v308_v22 = vsel %vm307_vm2, %v225_v48, %v1314_v19  ;;  %v309_v23 = vsel %vm307_vm2, %v226_v49, %v1315_v18  ;;  %v98_v13 = vld [vmem:[%s1959_s3 + $0x28] sm:$0xff] }
 0x323   :  { %v353_v24 = vpack.c.bf16 %v339_v21, %v338_v20  ;;  %v1328_v25 = vpop.permute.xlu1 %1327  ;;  %v348_v26 = vpack.c.bf16 %v309_v23, %v308_v22  ;;  %v1318_v29 = vpop.permute.xlu0 %1317  ;;  %v100_v21 = vld [vmem:[%s1959_s3 + $0x38] sm:$0xff] }
 0x324   :  { %v1330_v27 = vunpack.i.h.bf16 %v1328_v25  ;;  %v1329_v28 = vunpack.i.l.bf16 %v1328_v25  ;;  %v1320_v32 = vunpack.i.h.bf16 %v1318_v29  ;;  %v1319_v33 = vunpack.i.l.bf16 %v1318_v29 }
 0x325   :  { %1258 = vmatprep.subr.msk.bf16.mxu1 %vm354_vm3, %v353_v24  ;;  %1193 = vmatprep.mubr.msk.bf16.mxu1 %vm354_vm3, %v348_v26  ;;  %v371_v31 = vsel %vm354_vm3, %v353_v24, 0 }
 0x326   :  { %1192 = vmatpush3.bf16.xpose.msra.mxu1 %v371_v31  ;;  %v310_v36 = vsel %vm307_vm2, %v1279_v59, %v1329_v28  ;;  %v311_v39 = vsel %vm307_vm2, %v1280_v58, %v1330_v27  ;;  %v94_v59 = vld [vmem:[%s1959_s3 + $0x8] sm:$0xff]  ;;  %s1548_s3 = smov 32  }
 0x327   :  { %v1333_v35 = vpop.permute.xlu1 %1332  ;;  %1213 = vmatprep.subr.bf16.mxu1 %v1540_v7  ;;  %v349_v44 = vpack.c.bf16 %v311_v39, %v310_v36  ;;  %v1323_v46 = vpop.permute.xlu0 %1322 }
 0x328   :  { %v1335_v40 = vunpack.i.h.bf16 %v1333_v35  ;;  %v1334_v41 = vunpack.i.l.bf16 %v1333_v35  ;;  %v1325_v50 = vunpack.i.h.bf16 %v1323_v46  ;;  %v1324_v51 = vunpack.i.l.bf16 %v1323_v46 }
 0x32a   :  { %v312_v42 = vsel %vm307_vm2, %v1319_v33, %v1334_v41  ;;  %v313_v43 = vsel %vm307_vm2, %v1320_v32, %v1335_v40 }
 0x32b   :  { %v350_v45 = vpack.c.bf16 %v313_v43, %v312_v42  ;;  %v1338_v47 = vpop.permute.xlu1 %1337 }
 0x32c   :  { %v1340_v48 = vunpack.i.h.bf16 %v1338_v47  ;;  %v1339_v49 = vunpack.i.l.bf16 %v1338_v47 }
 0x32d   :  { %1194 = vmatmul.mubr.msk.bf16.vlgmr.msra.gmra.mrb[0].mxu1 %vm354_vm3, %v349_v44 }
 0x32e   :  { %1197 = vmatprep.mubr.msk.bf16.mxu1 %vm354_vm3, %v350_v45  ;;  %v314_v52 = vsel %vm307_vm2, %v1324_v51, %v1339_v49  ;;  %v315_v53 = vsel %vm307_vm2, %v1325_v50, %v1340_v48 }
 0x32f   :  { %v351_v54 = vpack.c.bf16 %v315_v53, %v314_v52 }
 0x335   :  { %1198 = vmatmul.mubr.msk.bf16.gmra.mrb[4].mxu1 %vm354_vm3, %v351_v54 }
 0x336   :  { %1221 = vmatprep.mubr.msk.bf16.mxu1 %vm1541_vm1, %v1540_v7 }
 0x400   :  { %v1195_v56 = vpop.f32.mrb[0].mxu1 }
 0x401   :  { %v407_v58 = vpop.f32.mrb[1].mxu1  ;;  %v416_v63 = vadd.f32 %v1195_v56, %v95_v57 }
 0x402   :  { %v408_v60 = vadd.f32 %v407_v58, %v93_v55  ;;  %v1196_v61 = vpop.f32.mrb[2].mxu1 }
 0x403   :  { %v410_v62 = vpop.f32.mrb[3].mxu1  ;;  %v419_v8 = vadd.f32 %v1196_v61, %v96_v4  ;;  %v445_v10 = vsel %vm438_vm4, %v416_v63, -inf }
 0x404   :  { %v411_v2 = vadd.f32 %v410_v62, %v94_v59  ;;  %v439_v3 = vsel %vm438_vm4, %v408_v60, -inf }
 0x405   :  { %440 = vmax.xlane.f32.xlu0 %v439_v3  ;;  %v448_v20 = vsel %vm438_vm4, %v419_v8, -inf }
 0x406   :  { %v442_v5 = vsel %vm438_vm4, %v411_v2, -inf }
 0x407   :  { %443 = vmax.xlane.f32.xlu1 %v442_v5 }
 0x408   :  { %v1199_v9 = vpop.f32.mrb[4].mxu1 }
 0x409   :  { %v423_v12 = vpop.f32.mrb[5].mxu1  ;;  %446 = vmax.xlane.f32.xlu0 %v445_v10  ;;  %v432_v17 = vadd.f32 %v1199_v9, %v99_v11 }
 0x40a   :  { %v424_v14 = vadd.f32 %v423_v12, %v97_v6  ;;  %v1200_v15 = vpop.f32.mrb[6].mxu1 }
 0x40b   :  { %v426_v16 = vpop.f32.mrb[7].mxu1  ;;  %v435_v22 = vadd.f32 %v1200_v15, %v100_v21  ;;  %v457_v23 = vsel %vm438_vm4, %v432_v17, -inf }
 0x40c   :  { %v427_v18 = vadd.f32 %v426_v16, %v98_v13  ;;  %v451_v19 = vsel %vm438_vm4, %v424_v14, -inf }
 0x40d   :  { %452 = vmax.xlane.f32.xlu1 %v451_v19  ;;  %449 = vmax.xlane.f32.xlu0 %v448_v20  ;;  %v460_v25 = vsel %vm438_vm4, %v435_v22, -inf }
 0x40e   :  { %v454_v24 = vsel %vm438_vm4, %v427_v18, -inf }
 0x411   :  { %458 = vmax.xlane.f32.xlu1 %v457_v23  ;;  %455 = vmax.xlane.f32.xlu0 %v454_v24 }
 0x415   :  { %461 = vmax.xlane.f32.xlu0 %v460_v25 }
 0x422   :  { %1342 = vrot.lane.b32.xlu1 %v1341_v37, %s1545_s24 }
 0x492   :  { %v441_v26 = vpop.xlane.xlu0 %440 }
 0x493   :  { %v463_v27 = vsub.f32 %v408_v60, %v441_v26 }
 0x494   :  { %v444_v31 = vpop.xlane.xlu1 %443 }
 0x495   :  { %v471_v32 = vmul.f32 1.442695, %v463_v27  ;;  %v464_v40 = vsub.f32 %v411_v2, %v444_v31 }
 0x496   :  { %v447_v28 = vpop.xlane.xlu0 %446 }
 0x497   :  { %v465_v29 = vsub.f32 %v416_v63, %v447_v28  ;;  %v473_v44 = vmul.f32 1.442695, %v464_v40 }
 0x499   :  { %v475_v33 = vmul.f32 1.442695, %v465_v29 }
 0x49a   :  { %v450_v35 = vpop.xlane.xlu0 %449  ;;  %v453_v39 = vpop.xlane.xlu1 %452 }
 0x49b   :  { %1397 = vpow2.f32 %v475_v33  ;;  %v466_v36 = vsub.f32 %v419_v8, %v450_v35  ;;  %v467_v45 = vsub.f32 %v424_v14, %v453_v39 }
 0x49c   :  { %1399 = vpow2.f32 %v471_v32 }
 0x49d   :  { %v477_v41 = vmul.f32 1.442695, %v466_v36  ;;  %v479_v48 = vmul.f32 1.442695, %v467_v45 }
 0x49e   :  { %v456_v42 = vpop.xlane.xlu0 %455  ;;  %v459_v46 = vpop.xlane.xlu1 %458 }
 0x49f   :  { %v468_v43 = vsub.f32 %v427_v18, %v456_v42  ;;  %1401 = vpow2.f32 %v477_v41  ;;  %v469_v49 = vsub.f32 %v432_v17, %v459_v46 }
 0x4a1   :  { %v481_v37 = vmul.f32 1.442695, %v468_v43  ;;  %v483_v53 = vmul.f32 1.442695, %v469_v49  ;;  %v1365_v43 = vld [vmem:[%s1962_s6] sm:$0xff]  }
 0x4a2   :  { %v462_v50 = vpop.xlane.xlu0 %461  ;;  %v1343_v8 = vpop.permute.xlu1 %1342  ;;  %1214 = vmatpush3.bf16.msra.mxu1 %v1365_v43 }
 0x4a3   :  { %1403 = vpow2.f32 %v481_v37  ;;  %v470_v54 = vsub.f32 %v435_v22, %v462_v50  ;;  %v1345_v9 = vunpack.i.h.bf16 %v1343_v8  ;;  %v1344_v10 = vunpack.i.l.bf16 %v1343_v8  ;;  %1215 = vmatprep.subr.bf16.mxu1 %v1540_v7  ;;  %v1368_v50 = vld [vmem:[%s1962_s6 + $0x18] sm:$0xff]  }
 0x4a4   :  { %1405 = vpow2.f32 %v473_v44  ;;  %v1366_v44 = vld [vmem:[%s1962_s6 + $0x8] sm:$0xff]  }
 0x4a5   :  { %v1793_v47 = vpop.eup %1397  ;;  %1407 = vpow2.f32 %v479_v48  ;;  %v485_v57 = vmul.f32 1.442695, %v470_v54  ;;  %v532_v11 = vpack.c.bf16 %v1345_v9, %v1344_v10 }
 0x4a6   :  { %v493_v51 = vsel %vm438_vm4, %v1793_v47, 0.0  ;;  %v1400_v52 = vpop.eup %1399  ;;  %1409 = vpow2.f32 %v483_v53  ;;  %1216 = vmatpush3.bf16.msra.mxu1 %v1366_v44 }
 0x4a7   :  { %494 = vadd.xlane.f32.xlu0 %v493_v51  ;;  %v487_v55 = vsel %vm438_vm4, %v1400_v52, 0.0  ;;  %1411 = vpow2.f32 %v485_v57  ;;  %1217 = vmatprep.subr.bf16.mxu1 %v1540_v7 }
 0x4a9   :  { %v1402_v56 = vpop.eup %1401 }
 0x4aa   :  { %v496_v59 = vsel %vm438_vm4, %v1402_v56, 0.0 }
 0x4ab   :  { %488 = vadd.xlane.f32.xlu0 %v487_v55 }
 0x4ad   :  { %v1404_v58 = vpop.eup %1403 }
 0x4ae   :  { %v1406_v60 = vpop.eup %1405  ;;  %v502_v61 = vsel %vm438_vm4, %v1404_v58, 0.0 }
 0x4af   :  { %497 = vadd.xlane.f32.xlu0 %v496_v59  ;;  %503 = vadd.xlane.f32.xlu1 %v502_v61  ;;  %v490_v62 = vsel %vm438_vm4, %v1406_v60, 0.0  ;;  %v1408_v63 = vpop.eup %1407 }
 0x4b0   :  { %v499_v2 = vsel %vm438_vm4, %v1408_v63, 0.0  ;;  %v1410_v3 = vpop.eup %1409 }
 0x4b1   :  { %v505_v4 = vsel %vm438_vm4, %v1410_v3, 0.0  ;;  %v1412_v5 = vpop.eup %1411 }
 0x4b2   :  { %v508_v6 = vsel %vm438_vm4, %v1412_v5, 0.0 }
 0x4b3   :  { %491 = vadd.xlane.f32.xlu0 %v490_v62 }
 0x4b7   :  { %500 = vadd.xlane.f32.xlu0 %v499_v2 }
 0x4bb   :  { %506 = vadd.xlane.f32.xlu0 %v505_v4 }
 0x4bf   :  { %509 = vadd.xlane.f32.xlu0 %v508_v6 }
 0x4d5   :  { %535 = vrot.lane.b32.xlu0 %v531_v38, %s1548_s3 }
 0x4d9   :  { %537 = vrot.lane.b32.xlu0 %v532_v11, %s1548_s3 }
 0x534   :  { %v495_v12 = vpop.xlane.xlu0 %494 }
 0x538   :  { %v489_v13 = vpop.xlane.xlu0 %488 }
 0x539   :  { %1413 = vrcp.f32 %v489_v13 }
 0x53c   :  { %v498_v14 = vpop.xlane.xlu0 %497  ;;  %v504_v17 = vpop.xlane.xlu1 %503 }
 0x540   :  { %v492_v15 = vpop.xlane.xlu0 %491 }
 0x541   :  { %1415 = vrcp.f32 %v492_v15 }
 0x542   :  { %1417 = vrcp.f32 %v498_v14 }
 0x543   :  { %v1414_v19 = vpop.eup %1413 }
 0x544   :  { %v501_v16 = vpop.xlane.xlu0 %500  ;;  %v519_v34 = vmul.f32 %v1414_v19, %v1400_v52 }
 0x545   :  { %1419 = vrcp.f32 %v501_v16 }
 0x546   :  { %1421 = vrcp.f32 %v495_v12 }
 0x547   :  { %1423 = vrcp.f32 %v504_v17 }
 0x548   :  { %v507_v18 = vpop.xlane.xlu0 %506 }
 0x54b   :  { %v1416_v20 = vpop.eup %1415 }
 0x54c   :  { %v510_v30 = vpop.xlane.xlu0 %509  ;;  %v520_v38 = vmul.f32 %v1416_v20, %v1406_v60  ;;  %v1418_v22 = vpop.eup %1417 }
 0x54d   :  { %1425 = vrcp.f32 %v510_v30  ;;  %v522_v27 = vmul.f32 %v1418_v22, %v1402_v56  ;;  %v1375_v22 = vld [vmem:[%s1964_s8 + $0x20] ss:$8 sps:$4 sm:$0xff]  }
 0x54e   :  { %v527_v21 = vpack.c.bf16 %v520_v38, %v519_v34  ;;  %1427 = vrcp.f32 %v507_v18  ;;  %v1374_v34 = vld [vmem:[%s1964_s8 + $0x14] ss:$8 sps:$4 sm:$0xff]   ;;  %v1372_v38 = vld [vmem:[%s1964_s8 + $0x10] ss:$8 sps:$4 sm:$0xff]  }
 0x54f   :  { %v1420_v24 = vpop.eup %1419 }
 0x550   :  { %1205 = vmatprep.mubr.msk.bf16.mxu0 %vm438_vm4, %v527_v21  ;;  %v536_v23 = vpop.permute.xlu0 %535  ;;  %v1422_v25 = vpop.eup %1421  ;;  %v523_v29 = vmul.f32 %v1420_v24, %v1408_v63  ;;  %v1377_v21 = vld [vmem:[%s1964_s8 + $0x24] ss:$8 sps:$4 sm:$0xff]   ;;  %v1378_v24 = vld [vmem:[%s1964_s8 + $0x30] ss:$8 sps:$4 sm:$0xff]  }
 0x551   :  { %1201 = vmatprep.subr.bf16.mxu0 %v536_v23  ;;  %v1424_v26 = vpop.eup %1423  ;;  %v521_v31 = vmul.f32 %v1422_v25, %v1793_v47  ;;  %v1367_v47 = vld [vmem:[%s1962_s6 + $0x10] sm:$0xff]   ;;  %v1550_v25 = vmov 0  }
 0x552   :  { %1202 = vmatpush3.bf16.msra.mxu0 %v536_v23  ;;  %v524_v32 = vmul.f32 %v1424_v26, %v1404_v58  ;;  %1218 = vmatpush3.bf16.msra.mxu1 %v1367_v47  ;;  %v1380_v23 = vld [vmem:[%s1964_s8 + $0x34] ss:$8 sps:$4 sm:$0xff]   ;;  %v1381_v26 = vld [vmem:[%s1965_s9] sm:$0xff]  }
 0x553   :  { %v528_v33 = vpack.c.bf16 %v522_v27, %v521_v31  ;;  %1219 = vmatprep.subr.bf16.mxu1 %v1540_v7  ;;  %v1382_v27 = vld [vmem:[%s1965_s9 + $0x8] sm:$0xff]   ;;  %v1385_v47 = vld [vmem:[%s1965_s9 + $0x20] sm:$0xff]  }
 0x554   :  { %v538_v28 = vpop.permute.xlu0 %537  ;;  %v529_v36 = vpack.c.bf16 %v524_v32, %v523_v29 }
 0x555   :  { %1203 = vmatprep.subr.bf16.mxu0 %v538_v28 }
 0x556   :  { %1204 = vmatpush3.bf16.msra.mxu0 %v538_v28  ;;  %1220 = vmatpush3.bf16.msra.mxu1 %v1368_v50  ;;  %v1388_v50 = vld [vmem:[%s1965_s9 + $0x38] sm:$0xff]  }
 0x557   :  { %v1426_v35 = vpop.eup %1425  ;;  %1225 = vmatprep.subr.bf16.mxu1 %v1540_v7 }
 0x558   :  { %v1428_v39 = vpop.eup %1427  ;;  %v526_v40 = vmul.f32 %v1426_v35, %v1412_v5 }
 0x559   :  { %1206 = vmatmul.mubr.msk.bf16.vlgmr.msra.gmra.mrb[4].mxu0 %vm438_vm4, %v528_v33  ;;  %v525_v41 = vmul.f32 %v1428_v39, %v1410_v3 }
 0x55a   :  { %1209 = vmatprep.mubr.msk.bf16.mxu0 %vm438_vm4, %v529_v36 }
 0x55b   :  { %v530_v42 = vpack.c.bf16 %v526_v40, %v525_v41  ;;  %v1116_v41 = vld [vmem:[%s1963_s7] ss:$0 sm:$0xff] }
 0x561   :  { %1210 = vmatmul.mubr.msk.bf16.gmra.mrb[8].mxu0 %vm438_vm4, %v530_v42 }
 0x562   :  { %837 = vmatprep.mubr.bf16.mxu0 %v1550_v25 }
 0x62c   :  { %v1207_v45 = vpop.f32.mrb[4].mxu0 }
 0x62d   :  { %v587_v37 = vpop.f32.mrb[5].mxu0 }
 0x62e   :  { %v1208_v46 = vpop.f32.mrb[6].mxu0 }
 0x62f   :  { %v1346_v48 = vpack.i.bf16 %v1208_v46, %v1207_v45  ;;  %v590_v49 = vpop.f32.mrb[7].mxu0  ;;  %v1384_v46 = vld [vmem:[%s1965_s9 + $0x18] sm:$0xff]  }
 0x631   :  { %1347 = vrot.lane.b32.xlu1 %v1346_v48, %s1549_s28  ;;  %v1386_v48 = vld [vmem:[%s1965_s9 + $0x28] sm:$0xff]  }
 0x634   :  { %v1211_v51 = vpop.f32.mrb[8].mxu0 }
 0x635   :  { %v603_v52 = vpop.f32.mrb[9].mxu0 }
 0x636   :  { %v1212_v53 = vpop.f32.mrb[10].mxu0 }
 0x637   :  { %v1356_v54 = vpack.i.bf16 %v1212_v53, %v1211_v51  ;;  %v606_v55 = vpop.f32.mrb[11].mxu0 }
 0x638   :  { %v1351_v56 = vpack.i.bf16 %v606_v55, %v603_v52 }
 0x63a   :  { %1352 = vrot.lane.b32.xlu0 %v1351_v56, %s1548_s3 }
 0x63e   :  { %1357 = vrot.lane.b32.xlu0 %v1356_v54, %s1542_s19 }
 0x6a3   :  { %v1348_v57 = vpop.permute.xlu1 %1347 }
 0x6a4   :  { %v1350_v59 = vunpack.i.h.bf16 %v1348_v57  ;;  %v1349_v60 = vunpack.i.l.bf16 %v1348_v57 }
 0x6a6   :  { %v642_v2 = vsel %vm354_vm3, %v587_v37, %v1349_v60  ;;  %v643_v3 = vsel %vm354_vm3, %v590_v49, %v1350_v59  ;;  %v1383_v37 = vld [vmem:[%s1965_s9 + $0x10] sm:$0xff]  }
 0x6a7   :  { %v1387_v49 = vld [vmem:[%s1965_s9 + $0x30] sm:$0xff]  }
 0x6ac   :  { %v1353_v58 = vpop.permute.xlu0 %1352 }
 0x6ad   :  { %v1355_v61 = vunpack.i.h.bf16 %v1353_v58  ;;  %v1354_v62 = vunpack.i.l.bf16 %v1353_v58 }
 0x6af   :  { %v645_v6 = vsel %vm438_vm4, %v643_v3, %v1355_v61  ;;  %v644_v8 = vsel %vm438_vm4, %v642_v2, %v1354_v62 }
 0x6b0   :  { %v1358_v63 = vpop.permute.xlu0 %1357 }
 0x6b1   :  { %v1360_v4 = vunpack.i.h.bf16 %v1358_v63  ;;  %v1359_v5 = vunpack.i.l.bf16 %v1358_v63 }
 0x6b3   :  { %v647_v9 = vsel %vm646_vm5, %v644_v8, %v1359_v5  ;;  %v648_v10 = vsel %vm646_vm5, %v645_v6, %v1360_v4 }
 0x6b4   :  { %v649_v11 = vpack.c.bf16 %v648_v10, %v647_v9 }
 0x6b6   :  { %1222 = vmatmul.mubr.msk.bf16.vlgmr.msra.gmra.mrb[8].mxu1 %vm104_vm0, %v649_v11 }
 0x6b7   :  { %1241 = vmatprep.mubr.msk.bf16.mxu1 %vm1541_vm1, %v1540_v7  ;;  %1226 = vmatpush3.bf16.msra.mxu1 %v1381_v26 }
 0x6b8   :  { %1227 = vmatprep.subr.bf16.mxu1 %v1540_v7 }
 0x6bb   :  { %1228 = vmatpush3.bf16.msra.mxu1 %v1382_v27 }
 0x6bc   :  { %1229 = vmatprep.subr.bf16.mxu1 %v1540_v7 }
 0x6bf   :  { %1230 = vmatpush3.bf16.msra.mxu1 %v1383_v37 }
 0x6c0   :  { %1231 = vmatprep.subr.bf16.mxu1 %v1540_v7 }
 0x6c3   :  { %1232 = vmatpush3.bf16.msra.mxu1 %v1384_v46 }
 0x6c4   :  { %1233 = vmatprep.subr.bf16.mxu1 %v1540_v7 }
 0x6c7   :  { %1234 = vmatpush3.bf16.msra.mxu1 %v1385_v47 }
 0x6c8   :  { %1235 = vmatprep.subr.bf16.mxu1 %v1540_v7 }
 0x6cb   :  { %1236 = vmatpush3.bf16.msra.mxu1 %v1386_v48 }
 0x6cc   :  { %1237 = vmatprep.subr.bf16.mxu1 %v1540_v7 }
 0x6cf   :  { %1238 = vmatpush3.bf16.msra.mxu1 %v1387_v49 }
 0x6d0   :  { %1239 = vmatprep.subr.bf16.mxu1 %v1540_v7 }
 0x6d3   :  { %1240 = vmatpush3.bf16.msra.mxu1 %v1388_v50 }
 0x789   :  { %v719_v12 = vpop.f32.mrb[8].mxu1 }
 0x78a   :  { %v1840_v13 = vadd.f32 %v719_v12, %v1674_v0  ;;  %v1223_v14 = vpop.f32.mrb[9].mxu1  ;;  %v1371_v0 = vld [vmem:[%s1964_s8 + $0x4] ss:$8 sps:$4 sm:$0xff]  }
 0x78b   :  { %v722_v15 = vpop.f32.mrb[10].mxu1  ;;  %805 = vmatprep.subr.bf16.mxu0 %v1371_v0 }
 0x78c   :  { %v1843_v16 = vadd.f32 %v722_v15, %v1676_v1  ;;  %v1224_v17 = vpop.f32.mrb[11].mxu1  ;;  %v729_v18 = vmul.f32 %v1840_v13, %v1840_v13  ;;  %v1369_v1 = vld [vmem:[%s1964_s8] ss:$8 sps:$4 sm:$0xff]   ;;  %s1551_s8 = smov [#allocation8]  }
 0x78d   :  { %806 = vmatpush1.bf16.msra.mxu0 %v1369_v1  ;;  %s1084_s2 = sshll.u32 %s1551_s8, 4  ;;  %s1085_s2 = int_to_ptr.vmem [resolvable:$true] %s1084_s2 }
 0x78e   :  { %v731_v19 = vsel %vm104_vm0, %v729_v18, 0.0  ;;  %v730_v20 = vmul.f32 %v1843_v16, %v1843_v16  ;;  %807 = vmatprep.subr.bf16.mxu0 %v1374_v34  ;;  %p1512_p11 = scmp.lt.s32.totalorder %s1085_s2, %s1085_s2 }
 0x78f   :  { %732 = vadd.xlane.f32.xlu0 %v731_v19  ;;  %v1389_v19 = vld [vmem:[%s1967_s11] sm:$0xff]  }
 0x790   :  { %v734_v30 = vsel %vm104_vm0, %v730_v20, 0.0  ;;  %v1392_v20 = vld [vmem:[%s1967_s11 + $0x18] sm:$0xff]  }
 0x791   :  { %735 = vadd.xlane.f32.xlu1 %v734_v30  ;;  %808 = vmatpush1.bf16.msra.mxu0 %v1372_v38 }
 0x792   :  { %809 = vmatprep.subr.bf16.mxu0 %v1377_v21 }
 0x795   :  { %810 = vmatpush1.bf16.msra.mxu0 %v1375_v22 }
 0x796   :  { %811 = vmatprep.subr.bf16.mxu0 %v1380_v23 }
 0x799   :  { %812 = vmatpush1.bf16.msra.mxu0 %v1378_v24 }
 0x79a   :  { %1245 = vmatprep.subr.bf16.mxu0 %v1540_v7 }
 0x81c   :  { %v733_v28 = vpop.xlane.xlu0 %732 }
 0x81d   :  { %v737_v29 = vmul.f32 0.015625, %v733_v28 }
 0x81e   :  { %v736_v31 = vpop.xlane.xlu1 %735 }
 0x81f   :  { %v739_v32 = vadd.f32 1e-06, %v737_v29  ;;  %v738_v33 = vmul.f32 0.015625, %v736_v31  ;;  %v1135_v29 = vld [vmem:[%s1968_s12] ss:$0 sm:$0xff] }
 0x821   :  { %1429 = vrsqrt.f32 %v739_v32  ;;  %v740_v35 = vadd.f32 1e-06, %v738_v33 }
 0x823   :  { %1431 = vrsqrt.f32 %v740_v35 }
 0x82b   :  { %v1430_v36 = vpop.eup %1429 }
 0x82c   :  { %v743_v39 = vmul.f32 %v1430_v36, %v1840_v13 }
 0x82d   :  { %v1432_v40 = vpop.eup %1431 }
 0x82e   :  { %v744_v42 = vmul.f32 %v1432_v40, %v1843_v16  ;;  %v751_v43 = vmul.f32 %v1116_v41, %v743_v39 }
 0x830   :  { %v752_v44 = vmul.f32 %v1116_v41, %v744_v42 }
 0x832   :  { %v753_v45 = vpack.c.bf16 %v752_v44, %v751_v43 }
 0x834   :  { %1125 = vmatmul.mubr.msk.bf16.vlgmr.msra.gmra.mrb[12].mxu0 %vm104_vm0, %v753_v45 }
 0x835   :  { %1253 = vmatprep.mubr.msk.bf16.mxu0 %vm1541_vm1, %v1540_v7  ;;  %1246 = vmatpush3.bf16.msra.mxu0 %v1389_v19 }
 0x836   :  { %1247 = vmatprep.subr.bf16.mxu0 %v1540_v7 }
 0x907   :  { %v839_v51 = vpop.f32.mrb[12].mxu0 }
 0x908   :  { %v848_v52 = vmul.f32 0.5, %v839_v51  ;;  %v841_v53 = vpop.f32.mrb[13].mxu0 }
 0x909   :  { %v843_v54 = vpop.f32.mrb[14].mxu0 }
 0x90a   :  { %1433 = vtanh.f32 %v848_v52  ;;  %v849_v55 = vmul.f32 0.5, %v843_v54  ;;  %v845_v56 = vpop.f32.mrb[15].mxu0 }
 0x90c   :  { %1435 = vtanh.f32 %v849_v55 }
 0x914   :  { %v1434_v57 = vpop.eup %1433 }
 0x915   :  { %v852_v58 = vadd.f32 1.0, %v1434_v57 }
 0x916   :  { %v1436_v59 = vpop.eup %1435 }
 0x917   :  { %v854_v60 = vmul.f32 0.5, %v852_v58  ;;  %v853_v61 = vadd.f32 1.0, %v1436_v59 }
 0x919   :  { %v856_v62 = vmul.f32 %v854_v60, %v839_v51  ;;  %v855_v63 = vmul.f32 0.5, %v853_v61 }
 0x91b   :  { %v858_v2 = vmul.f32 %v856_v62, %v841_v53  ;;  %v857_v3 = vmul.f32 %v855_v63, %v843_v54 }
 0x91d   :  { %v859_v4 = vmul.f32 %v857_v3, %v845_v56 }
 0x91f   :  { %v860_v5 = vpack.c.bf16 %v859_v4, %v858_v2 }
 0x921   :  { %1242 = vmatmul.mubr.bf16.vlgmr.msra.gmra.mrb[12].mxu1 %v860_v5 }
 0x9f4   :  { %v959_v6 = vpop.f32.mrb[12].mxu1 }
 0x9f5   :  { %v966_v8 = vadd.f32 %v959_v6, %v1840_v13  ;;  %v1243_v9 = vpop.f32.mrb[13].mxu1  ;;  %v1390_v13 = vld [vmem:[%s1967_s11 + $0x8] sm:$0xff]  }
 0x9f6   :  { %v962_v10 = vpop.f32.mrb[14].mxu1  ;;  %1248 = vmatpush3.bf16.msra.mxu0 %v1390_v13 }
 0x9f7   :  { %v967_v11 = vadd.f32 %v962_v10, %v1843_v16  ;;  %v1244_v12 = vpop.f32.mrb[15].mxu1  ;;  %v969_v14 = vmul.f32 %v966_v8, %v966_v8  ;;  %1249 = vmatprep.subr.bf16.mxu0 %v1540_v7  ;;  %v1391_v16 = vld [vmem:[%s1967_s11 + $0x10] sm:$0xff]  }
 0x9f9   :  { %v971_v15 = vsel %vm104_vm0, %v969_v14, 0.0  ;;  %v970_v17 = vmul.f32 %v967_v11, %v967_v11 }
 0x9fa   :  { %972 = vadd.xlane.f32.xlu0 %v971_v15  ;;  %1250 = vmatpush3.bf16.msra.mxu0 %v1391_v16 }
 0x9fb   :  { %v974_v18 = vsel %vm104_vm0, %v970_v17, 0.0  ;;  %1251 = vmatprep.subr.bf16.mxu0 %v1540_v7  ;;  %v1134_v7 = vld [vmem:[%s1966_s10] ss:$0 sm:$0xff]  ;;  %s1507_s10 = scalar_lea.vmem %s1085_s2, 256 }
 0x9fc   :  { %p1508_p10 = scmp.ne.s32.totalorder %s1085_s2, %s1507_s10  ;;  %p1513_p12 = scmp.lt.s32.totalorder %s1507_s10, %s1507_s10 }
 0x9fe   :  { %975 = vadd.xlane.f32.xlu0 %v974_v18  ;;  %1252 = vmatpush3.bf16.msra.mxu0 %v1392_v20  ;;  %p1514_p13 = por %p1513_p12, %p1512_p11 }
 0xa00   :  { %p1515_p0 = pnand %p1514_p13, %p1508_p10 }
 0xa87   :  { %v973_v30 = vpop.xlane.xlu0 %972 }
 0xa88   :  { %v977_v0 = vmul.f32 0.015625, %v973_v30 }
 0xa8a   :  { %v979_v1 = vadd.f32 1e-06, %v977_v0 }
 0xa8b   :  { %v976_v34 = vpop.xlane.xlu0 %975 }
 0xa8c   :  { %1437 = vrsqrt.f32 %v979_v1  ;;  %v978_v38 = vmul.f32 0.015625, %v976_v34 }
 0xa8e   :  { %v980_v21 = vadd.f32 1e-06, %v978_v38 }
 0xa90   :  { %1439 = vrsqrt.f32 %v980_v21 }
 0xa96   :  { %v1438_v22 = vpop.eup %1437 }
 0xa97   :  { %v983_v23 = vmul.f32 %v1438_v22, %v966_v8 }
 0xa99   :  { %v991_v27 = vmul.f32 %v1134_v7, %v983_v23 }
 0xa9a   :  { %v1440_v24 = vpop.eup %1439 }
 0xa9b   :  { %v984_v25 = vmul.f32 %v1440_v24, %v967_v11 }
 0xa9d   :  { %v992_v26 = vmul.f32 %v1134_v7, %v984_v25 }
 0xa9f   :  { %v993_v28 = vpack.c.bf16 %v992_v26, %v991_v27 }
 0xaa1   :  { %1254 = vmatmul.mubr.msk.bf16.vlgmr.msra.gmra.mrb[16].mxu0 %vm104_vm0, %v993_v28 }
 0xb74   :  { %v1070_v31 = vpop.f32.mrb[16].mxu0 }
 0xb75   :  { %v1071_v32 = vadd.f32 %v1135_v29, %v1070_v31  ;;  %v1255_v33 = vpop.f32.mrb[17].mxu0 }
 0xb76   :  { %v1073_v35 = vpop.f32.mrb[18].mxu0 }
 0xb77   :  { %1077 = vst [vmem:[#allocation8] sm:$0xff] %v1071_v32  ;;  %v1074_v36 = vadd.f32 %v1135_v29, %v1073_v35  ;;  %v1256_v39 = vpop.f32.mrb[19].mxu0 }
 0xb79   :  { %1078 = vst [vmem:[#allocation8 + $0x8] sm:$0xff] %v1074_v36 }
 0xb7a   :  { %1518 = shalt.err (!%p1515_p0)
}
 0xb7b   :  { %s1519_s6 = scalar_lea.hbm %s1969_s13, 256 }
 0xb7c   :  { %p1520_p1 = scmp.ne.s32.totalorder %s1969_s13, %s1519_s6  ;;  %p1523_p2 = scmp.lt.u32.totalorder %s1519_s6, %s1969_s13 }
 0xb7e   :  { %p1525_p3 = pnand %p1523_p2, %p1520_p1 }
 0xb80   :  { %1528 = shalt.err (!%p1525_p3)
}
 0xb81   :  { %1090 = dma.vmem_to_hbm [thread:$0]  %s1085_s2, 256, %s1969_s13, [#allocation4], %s1537_s20, %s1537_s20, %s1538_s21  }
 0xb82   :  { %1533 = dma.done.wait [#allocation4], 256  }
 0xb83   :  { %1534 = vsyncadd [#allocation4], 4294967040 }
 0xb84   :  { %1094 = vsyncpa [#allocation3], 1 }
 0xb85   :  { %1095 = vsyncpa [#allocation6], 1 }
 0xb86   :  { %1096 = vsyncpa [#allocation4], 1 }

</bundles_post_ra>
